<compile_context>
chip_gen: v7x
topology: tpu7x:2x2x1
jax: 0.10.0
libtpu: 0.0.40
codegen_flags: <defaults>
</compile_context>

<pallas_src>
import jax
import jax.numpy as jnp
from jax.experimental import pallas as pl
from jax.experimental.pallas import tpu as pltpu


def _mean_kernel(x_ref, wf_ref, b_ref, o_ref, acc_ref):
    # x_ref  : (Bt, Ts, FD)  folded input slab (F tokens packed into lanes)
    # wf_ref : (FD, D)       fold matrix x (W^T / T), resident across the grid
    # b_ref  : (1, D)        bias, resident
    # o_ref  : (Bt, D)       output tile (same block across the seq axis)
    # acc_ref: (Bt, FD)      f32 partial-sum accumulator (VMEM scratch)
    k = pl.program_id(1)

    @pl.when(k == 0)
    def _init():
        acc_ref[...] = jnp.zeros_like(acc_ref)

    h = jnp.tanh(x_ref[...].astype(jnp.float32))   # VPU/EUP, full 128-lane vregs
    acc_ref[...] += jnp.sum(h, axis=1)             # sublane reduce -> (Bt, FD)

    @pl.when(k == pl.num_programs(1) - 1)
    def _finalize():
        # One small MXU matmul per batch tile: folds the F token groups AND
        # applies (1/T) * W^T. f32 operands keep 1e-5 accuracy at D=32; at
        # scaled D cast acc/wf to bf16 and keep f32 accumulation.
        y = jnp.dot(acc_ref[...], wf_ref[...], preferred_element_type=jnp.float32)
        o_ref[...] = (y + b_ref[...]).astype(o_ref.dtype)


def _pick_seq_block(tn, cap):
    """Largest multiple-of-8 divisor of tn that is <= cap, else the full axis."""
    cap = max(1, min(tn, cap))
    start = cap - cap % 8
    for d in range(start, 0, -8):
        if tn % d == 0:
            return d
    return tn  # full extent is always a legal block


def mean_module_forward(feature, weight, bias, *, batch_block=None, seq_block=None):
    """out[b] = mean_t( tanh(feature[b, t]) @ weight.T + bias ).  Returns (B, D) f32."""
    B, T, D = feature.shape
    assert weight.shape == (D, D) and bias.shape == (D,)

    # ---- Lane-density fold: pack F consecutive tokens into the lane axis.
    F = 1
    if D < 128 and 128 % D == 0 and T % (128 // D) == 0:
        F = 128 // D
    FD = F * D
    Tn = T // F
    x = feature.reshape(B, Tn, FD)  # contiguous view: group f <-> token t*F + f

    # ---- Fold the mean (1/T) and the F-group fold into the weight (one-time).
    #      w_fold[f*D + d, o] = weight[o, d] / T
    w_scaled_t = (weight.astype(jnp.float32) * jnp.float32(1.0 / T)).T   # (D, D)
    w_fold = jnp.tile(w_scaled_t, (F, 1))                                # (FD, D)
    b2 = bias.astype(jnp.float32).reshape(1, D)

    # ---- Tile selection: keep sublane dims multiples of 8 (or full), aim for
    #      ~2 MiB input slabs so the pipeline has many steps to overlap.
    itemsize = jnp.dtype(feature.dtype).itemsize
    if batch_block is None:
        batch_block = 8 if B % 8 == 0 else B   # full-B fallback stays legal
    assert B % batch_block == 0, "batch_block must divide B"
    if seq_block is None:
        target_bytes = 2 << 20
        rows = max(1, target_bytes // max(1, batch_block * FD * itemsize))
        seq_block = _pick_seq_block(Tn, rows)
    assert Tn % seq_block == 0, "seq_block must divide T // fold"

    grid = (B // batch_block, Tn // seq_block)

    slab_bytes = batch_block * seq_block * FD * itemsize
    vmem_need = (2 * slab_bytes              # double-buffered input
                 + 2 * FD * D * 4 + 2 * D * 4
                 + batch_block * FD * 4      # accumulator scratch
                 + 2 * batch_block * D * 4)  # double-buffered output
    vmem_limit = int(min(48 << 20, max(vmem_need + (1 << 20), 8 << 20)))

    out = pl.pallas_call(
        _mean_kernel,
        out_shape=jax.ShapeDtypeStruct((B, D), jnp.float32),
        grid_spec=pltpu.PrefetchScalarGridSpec(
            num_scalar_prefetch=0,
            grid=grid,
            in_specs=[
                pl.BlockSpec((batch_block, seq_block, FD), lambda i, k: (i, k, 0)),
                pl.BlockSpec((FD, D), lambda i, k: (0, 0)),   # resident weight
                pl.BlockSpec((1, D), lambda i, k: (0, 0)),    # resident bias
            ],
            out_specs=pl.BlockSpec((batch_block, D), lambda i, k: (i, 0)),
            scratch_shapes=[pltpu.VMEM((batch_block, FD), jnp.float32)],
        ),
        compiler_params=pltpu.CompilerParams(
            dimension_semantics=("parallel", "arbitrary"),
            vmem_limit_bytes=vmem_limit),
    )(x, w_fold, b2)
    return out


def reference_forward(feature, weight, bias):
    h = jnp.tanh(feature.astype(jnp.float32))
    y = jnp.einsum("btd,od->bto", h, weight) + bias
    return jnp.mean(y, axis=1)


if __name__ == "__main__":
    B, T, D = 2, 8, 32
    key = jax.random.PRNGKey(0)
    kx, kw, kb = jax.random.split(key, 3)

    feature = jax.random.normal(kx, (B, T, D), dtype=jnp.float32)

    # Deterministic PyTorch-style Linear init: U(-1/sqrt(D), 1/sqrt(D))
    bound = 1.0 / (D ** 0.5)
    weight = jax.random.uniform(kw, (D, D), jnp.float32, -bound, bound)
    bias = jax.random.uniform(kb, (D,), jnp.float32, -bound, bound)

    out = mean_module_forward(feature, weight, bias)
    out = jax.block_until_ready(out)

    ref = reference_forward(feature, weight, bias)
    assert out.shape == (B, D)
    assert jnp.allclose(out, ref, atol=1e-5, rtol=1e-5), "mismatch vs reference"

    print("KERNEL_OK")
</pallas_src>

<mosaic_0001>
module attributes {stable_mosaic.version = 11 : i64} {
  func.func @_mean_kernel(%arg0: i32, %arg1: i32, %arg2: memref<2x2x128xf32, #tpu.memory_space<vmem>>, %arg3: memref<128x32xf32, #tpu.memory_space<vmem>>, %arg4: memref<1x32xf32, #tpu.memory_space<vmem>>, %arg5: memref<2x32xf32, #tpu.memory_space<vmem>>, %arg6: memref<2x128xf32, #tpu.memory_space<vmem>>) attributes {dimension_semantics = [#tpu.dimension_semantics<parallel>, #tpu.dimension_semantics<arbitrary>], iteration_bounds = array<i64: 1, 1>, scalar_prefetch = 0 : i64, scratch_operands = 1 : i64, tpu.core_type = #tpu.core_type<tc>, window_params = [{transform_indices = @transform_0, window_bounds = array<i64: 2, 2, 128>}, {pipeline_mode = #tpu.pipeline_mode<synchronous>, transform_indices = @transform_1, window_bounds = array<i64: 128, 32>}, {pipeline_mode = #tpu.pipeline_mode<synchronous>, transform_indices = @transform_2, window_bounds = array<i64: 1, 32>}, {transform_indices = @transform_3, window_bounds = array<i64: 2, 32>}]} {
    %c0_i32 = arith.constant 0 : i32
    %0 = arith.cmpi eq, %arg1, %c0_i32 : i32
    %1 = arith.extui %0 : i1 to i32
    %c0_i32_0 = arith.constant 0 : i32
    %2 = arith.cmpi ne, %1, %c0_i32_0 : i32
    scf.if %2 {
      %cst_9 = arith.constant 0.000000e+00 : f32
      %12 = vector.broadcast %cst_9 : f32 to vector<2x128xf32>
      %c0_10 = arith.constant 0 : index
      %c0_11 = arith.constant 0 : index
      %13 = vector.load %arg6[%c0_10, %c0_11] : memref<2x128xf32, #tpu.memory_space<vmem>>, vector<2x128xf32>
      tpu.vector_store %arg6[%c0_10, %c0_11], %12 {strides = array<i32>} : memref<2x128xf32, #tpu.memory_space<vmem>>, vector<2x128xf32>,
    } else {
    }
    %c0 = arith.constant 0 : index
    %c0_1 = arith.constant 0 : index
    %c0_2 = arith.constant 0 : index
    %3 = vector.load %arg2[%c0, %c0_1, %c0_2] : memref<2x2x128xf32, #tpu.memory_space<vmem>>, vector<2x2x128xf32>
    %4 = math.tanh %3 : vector<2x2x128xf32>
    %c0_3 = arith.constant 0 : index
    %c0_4 = arith.constant 0 : index
    %5 = vector.load %arg6[%c0_3, %c0_4] : memref<2x128xf32, #tpu.memory_space<vmem>>, vector<2x128xf32>
    %cst = arith.constant dense<0.000000e+00> : vector<2x128xf32>
    %6 = vector.multi_reduction <add>, %4, %cst [1] : vector<2x2x128xf32> to vector<2x128xf32>
    %7 = arith.addf %5, %6 : vector<2x128xf32>
    %c0_5 = arith.constant 0 : index
    %c0_6 = arith.constant 0 : index
    %8 = vector.load %arg6[%c0_5, %c0_6] : memref<2x128xf32, #tpu.memory_space<vmem>>, vector<2x128xf32>
    tpu.vector_store %arg6[%c0_5, %c0_6], %7 {strides = array<i32>} : memref<2x128xf32, #tpu.memory_space<vmem>>, vector<2x128xf32>,
    %c0_i32_7 = arith.constant 0 : i32
    %9 = arith.cmpi eq, %arg1, %c0_i32_7 : i32
    %10 = arith.extui %9 : i1 to i32
    %c0_i32_8 = arith.constant 0 : i32
    %11 = arith.cmpi ne, %10, %c0_i32_8 : i32
    scf.if %11 {
      %c0_9 = arith.constant 0 : index
      %c0_10 = arith.constant 0 : index
      %12 = vector.load %arg6[%c0_9, %c0_10] : memref<2x128xf32, #tpu.memory_space<vmem>>, vector<2x128xf32>
      %c0_11 = arith.constant 0 : index
      %c0_12 = arith.constant 0 : index
      %13 = vector.load %arg3[%c0_11, %c0_12] : memref<128x32xf32, #tpu.memory_space<vmem>>, vector<128x32xf32>
      %cst_13 = arith.constant dense<0.000000e+00> : vector<2x32xf32>
      %14 = tpu.matmul %12, %13, %cst_13 {dimension_numbers = #tpu.dot_dimension_numbers<[1], [0], [0], [1], [0, 0, 1, 1], [], []>} : vector<2x128xf32>, vector<128x32xf32>, vector<2x32xf32> -> vector<2x32xf32>
      %c0_14 = arith.constant 0 : index
      %c0_15 = arith.constant 0 : index
      %15 = vector.load %arg4[%c0_14, %c0_15] : memref<1x32xf32, #tpu.memory_space<vmem>>, vector<1x32xf32>
      %16 = vector.broadcast %15 : vector<1x32xf32> to vector<2x32xf32>
      %17 = arith.addf %14, %16 : vector<2x32xf32>
      %c0_16 = arith.constant 0 : index
      %c0_17 = arith.constant 0 : index
      %18 = vector.load %arg5[%c0_16, %c0_17] : memref<2x32xf32, #tpu.memory_space<vmem>>, vector<2x32xf32>
      tpu.vector_store %arg5[%c0_16, %c0_17], %17 {strides = array<i32>} : memref<2x32xf32, #tpu.memory_space<vmem>>, vector<2x32xf32>,
    } else {
    }
    return
  }
  func.func @transform_0(%arg0: i32, %arg1: i32) -> (i32, i32, i32) {
    %c0_i32 = arith.constant 0 : i32
    %c0_i32_0 = arith.constant 0 : i32
    return %arg0, %arg1, %c0_i32 : i32, i32, i32
  }
  func.func @transform_1(%arg0: i32, %arg1: i32) -> (i32, i32) {
    %c0_i32 = arith.constant 0 : i32
    %c0_i32_0 = arith.constant 0 : i32
    %c0_i32_1 = arith.constant 0 : i32
    return %c0_i32, %c0_i32_0 : i32, i32
  }
  func.func @transform_2(%arg0: i32, %arg1: i32) -> (i32, i32) {
    %c0_i32 = arith.constant 0 : i32
    %c0_i32_0 = arith.constant 0 : i32
    %c0_i32_1 = arith.constant 0 : i32
    return %c0_i32, %c0_i32_0 : i32, i32
  }
  func.func @transform_3(%arg0: i32, %arg1: i32) -> (i32, i32) {
    %c0_i32 = arith.constant 0 : i32
    %c0_i32_0 = arith.constant 0 : i32
    return %arg0, %c0_i32 : i32, i32
  }
}

</mosaic_0001>

<bundles_post_ra>
// kernel: tpu_custom_call.1
= control target key start
LH: loop header
LB: loop body
LE: loop exit
PB: predicated region body
PF: predicated region fallthrough
CT: control target
= control target key end

     0   :  { %v269_v3 = vmov 0.0|0.0   ;;  %v270_v6 = vmov 0.0   ;;  %vm271_vm0 = vmmov 0   ;;  %s362_s0 = inlined_call_operand.vmem [shape: f32[2,2,128], index: 0, kind: input, shape index: {}]   ;;  %s363_s1 = inlined_call_operand.vmem [shape: f32[128,32], index: 1, kind: input, shape index: {}]   ;;  %s364_s2 = inlined_call_operand.vmem [shape: f32[1,32], index: 2, kind: input, shape index: {}]   ;;  %s365_s3 = inlined_call_operand.hbm [shape: f32[2,32], index: 3, kind: output, shape index: {}]  }
   0x1   :  { %v51_v0 = vld [vmem:[%s363_s1] sm:$0xff]  ;;  %v52_v1 = vld [vmem:[%s363_s1 + $0x8] sm:$0xff]  ;;  %v53_v2 = vld [vmem:[%s363_s1 + $0x10] sm:$0xff]  ;;  %213 = vmatprep.subr.bf16.mxu0 %v269_v3  ;;  %19 = vst [vmem:[#allocation2] sm:$0x3] %v270_v6  ;;  %210 = vmatprep.mubr.msk.f32.mxu0 %vm271_vm0, %v270_v6 }
   0x2   :  { %v214_v4 = vpack.c.bf16 %v52_v1, %v51_v0  ;;  %v54_v5 = vld [vmem:[%s363_s1 + $0x18] sm:$0xff]  ;;  %v55_v8 = vld [vmem:[%s363_s1 + $0x20] sm:$0xff]  ;;  %v56_v9 = vld [vmem:[%s363_s1 + $0x28] sm:$0xff] }
   0x3   :  { %v217_v7 = vpack.c.bf16 %v54_v5, %v53_v2  ;;  %v20_v10 = vld [vmem:[%s362_s0] sm:$0x3]  ;;  %v21_v11 = vld [vmem:[%s362_s0 + $0x2] sm:$0x3] }
   0x4   :  { %215 = vmatpush3.bf16.msra.mxu0 %v214_v4  ;;  %241 = vtanh.f32 %v20_v10 }
   0x5   :  { %216 = vmatprep.subr.bf16.mxu0 %v269_v3 }
   0x6   :  { %8 = vsyncpa [#allocation4], 0  ;;  %v220_v12 = vpack.c.bf16 %v56_v9, %v55_v8  ;;  %243 = vtanh.f32 %v21_v11  ;;  %v57_v13 = vld [vmem:[%s363_s1 + $0x30] sm:$0xff]  ;;  %v58_v14 = vld [vmem:[%s363_s1 + $0x38] sm:$0xff]  ;;  %vm25_vm1 = vcmask 1041408   ;;  %vm42_vm2 = vcmask 1041409  }
   0x7   :  { %v223_v15 = vpack.c.bf16 %v58_v14, %v57_v13  ;;  %v59_v16 = vld [vmem:[%s363_s1 + $0x40] sm:$0xff]  ;;  %v60_v17 = vld [vmem:[%s363_s1 + $0x48] sm:$0xff]  ;;  %v61_v20 = vld [vmem:[%s363_s1 + $0x50] sm:$0xff]  ;;  %vm144_vm3 = vcmask 254976  }
   0x8   :  { %218 = vmatpush3.bf16.msra.mxu0 %v217_v7  ;;  %v226_v18 = vpack.c.bf16 %v60_v17, %v59_v16  ;;  %v62_v21 = vld [vmem:[%s363_s1 + $0x58] sm:$0xff]  ;;  %v63_v28 = vld [vmem:[%s363_s1 + $0x60] sm:$0xff]  ;;  %v64_v29 = vld [vmem:[%s363_s1 + $0x68] sm:$0xff] }
   0x9   :  { %219 = vmatprep.subr.bf16.mxu0 %v269_v3  ;;  %v229_v26 = vpack.c.bf16 %v62_v21, %v61_v20  ;;  %v232_v33 = vpack.c.bf16 %v64_v29, %v63_v28  ;;  %v65_v35 = vld [vmem:[%s363_s1 + $0x70] sm:$0xff]  ;;  %v66_v36 = vld [vmem:[%s363_s1 + $0x78] sm:$0xff]  ;;  %v24_v43 = vld [vmem:[#allocation2] sm:$0x3]  ;;  %s272_s1 = smov [#allocation3]  }
   0xa   :  { %v235_v40 = vpack.c.bf16 %v66_v36, %v65_v35  ;;  %v160_v48 = vld [vmem:[%s364_s2] ss:$0 sm:$0xff]  ;;  %s152_s22 = sshll.u32 %s272_s1, 4  ;;  %s153_s22 = int_to_ptr.vmem [resolvable:$true] %s152_s22 }
   0xb   :  { %s245_s23 = scalar_lea.vmem %s153_s22, 32  ;;  %p250_p1 = scmp.lt.s32.totalorder %s153_s22, %s153_s22 }
   0xc   :  { %221 = vmatpush3.bf16.msra.mxu0 %v220_v12  ;;  %p246_p0 = scmp.ne.s32.totalorder %s153_s22, %s245_s23  ;;  %p251_p2 = scmp.lt.s32.totalorder %s245_s23, %s245_s23 }
   0xd   :  { %222 = vmatprep.subr.bf16.mxu0 %v269_v3 }
   0xe   :  { %v242_v19 = vpop.eup %241  ;;  %p252_p3 = por %p251_p2, %p250_p1 }
   0xf   :  { %v26_v23 = vsel %vm25_vm1, %v242_v19, 0.0 }
  0x10   :  { %224 = vmatpush3.bf16.msra.mxu0 %v223_v15  ;;  %v244_v22 = vpop.eup %243  ;;  %v27_v24 = vrot.slane %v26_v23, 4  ;;  %p253_p4 = pnand %p252_p3, %p246_p0 }
  0x11   :  { %225 = vmatprep.subr.bf16.mxu0 %v269_v3  ;;  %v33_v25 = vsel %vm25_vm1, %v244_v22, 0.0 }
  0x12   :  { %v34_v27 = vrot.slane %v33_v25, 4  ;;  %v28_v30 = vadd.f32 %v27_v24, %v26_v23 }
  0x14   :  { %227 = vmatpush3.bf16.msra.mxu0 %v226_v18  ;;  %v35_v31 = vadd.f32 %v34_v27, %v33_v25  ;;  %v29_v32 = vrot.slane %v28_v30, 2 }
  0x15   :  { %228 = vmatprep.subr.bf16.mxu0 %v269_v3 }
  0x16   :  { %v36_v34 = vrot.slane %v35_v31, 2  ;;  %v30_v37 = vadd.f32 %v29_v32, %v28_v30 }
  0x18   :  { %230 = vmatpush3.bf16.msra.mxu0 %v229_v26  ;;  %v37_v38 = vadd.f32 %v36_v34, %v35_v31  ;;  %v31_v39 = vrot.slane %v30_v37, 1 }
  0x19   :  { %231 = vmatprep.subr.bf16.mxu0 %v269_v3 }
  0x1a   :  { %v38_v41 = vrot.slane %v37_v38, 1  ;;  %v32_v42 = vadd.f32 %v31_v39, %v30_v37 }
  0x1c   :  { %233 = vmatpush3.bf16.msra.mxu0 %v232_v33  ;;  %v39_v44 = vadd.f32 %v38_v41, %v37_v38 }
  0x1d   :  { %234 = vmatprep.subr.bf16.mxu0 %v269_v3 }
  0x1e   :  { %v43_v45 = vsel %vm42_vm2, %v39_v44, %v32_v42 }
  0x1f   :  { %v45_v46 = vadd.f32 %v43_v45, %v24_v43 }
  0x20   :  { %236 = vmatpush3.bf16.msra.mxu0 %v235_v40 }
  0x21   :  { %46 = vst [vmem:[#allocation2] sm:$0x3] %v45_v46 }
  0x28   :  { %v50_v47 = vld [vmem:[#allocation2] sm:$0x3] }
  0x29   :  { %211 = vmatmul.mubr.f32.vlgmr.msra.gmra.mrb[0].mxu0 %v50_v47 }
  0xfc   :  { %v140_v49 = vpop.f32.mrb[0].mxu0 }
  0xfd   :  { %v141_v50 = vadd.f32 %v160_v48, %v140_v49  ;;  %v212_v51 = vpop.f32.mrb[1].mxu0 }
  0xff   :  { %145 = vst.msk [vmem:[#allocation3] sm:$0x3] %vm144_vm3, %v141_v50 }
 0x100   :  { %256 = shalt.err (!%p253_p4)
}
 0x101   :  { %s257_s26 = scalar_lea.hbm %s365_s3, 32 }
 0x102   :  { %p258_p5 = scmp.ne.s32.totalorder %s365_s3, %s257_s26  ;;  %p261_p6 = scmp.lt.u32.totalorder %s257_s26, %s365_s3 }
 0x104   :  { %p263_p7 = pnand %p261_p6, %p258_p5 }
 0x106   :  { %266 = shalt.err (!%p263_p7)
}
 0x107   :  { %155 = dma.vmem_to_hbm [thread:$0]  %s153_s22, 32, %s365_s3, [#allocation4]  }
 0x108   :  { %267 = dma.done.wait [#allocation4], 32  }
 0x109   :  { %268 = vsyncadd [#allocation4], 4294967264 }
 0x10a   :  { %159 = vsyncpa [#allocation4], 1 }

</bundles_post_ra>
